<compile_context>
chip_gen: v5e
topology: v5e:2x2
jax: 0.10.0
libtpu: 0.0.40
codegen_flags: <defaults>
</compile_context>

<pallas_src>
import jax
import jax.numpy as jnp
from jax.experimental import pallas as pl
from jax.experimental.pallas import tpu as pltpu

IN_FEATURES = 10
OUT_FEATURES = 20


def _fused_linear_add_relu_kernel(wt_ref, b_ref, x1_ref, x2_ref, x3_ref, o_ref):
    # (tb, 10) @ (10, 20) -> (tb, 20), f32 accumulation on the MXU.
    acc = jnp.dot(x1_ref[...], wt_ref[...], preferred_element_type=jnp.float32)
    # bias (1, 20) broadcasts over the tile rows; adds + relu on the VPU.
    acc = acc + b_ref[...] + x2_ref[...] + x3_ref[...]
    o_ref[...] = jnp.maximum(acc, 0.0).astype(o_ref.dtype)


def _pick_batch_tile(B):
    """Batch-tile size: full extent for small B; otherwise multiple-of-8
    sublane tiles, capped at 4096 rows, with >= 2 grid steps (v7x 2-TC)."""
    if B <= 1024:
        return B
    half = -(-B // 2)                 # ceil(B / 2)
    half = ((half + 7) // 8) * 8      # round up to sublane multiple
    return min(4096, half)


def fused_linear_add_relu(x1, weight, bias, x2, x3):
    """Computes relu(x1 @ weight.T + bias + x2 + x3).

    x1: (B, 10), weight: (20, 10), bias: (20,), x2/x3: (B, 20) -> (B, 20)
    """
    B = x1.shape[0]

    wt = weight.T                         # (10, 20) — one tiny transpose
    b2d = bias.reshape(1, OUT_FEATURES)   # (1, 20) row-broadcast

    tb = _pick_batch_tile(B)
    n_tiles = pl.cdiv(B, tb)

    # TODO(synk): in production, bypass pallas_call entirely for tiny B (< a
    # few hundred) — a fused XLA expression is faster than any kernel launch.
    out = pl.pallas_call(
        _fused_linear_add_relu_kernel,
        out_shape=jax.ShapeDtypeStruct((B, OUT_FEATURES), jnp.float32),
        grid=(n_tiles,),
        in_specs=[
            pl.BlockSpec((IN_FEATURES, OUT_FEATURES), lambda i: (0, 0)),  # W^T (resident)
            pl.BlockSpec((1, OUT_FEATURES), lambda i: (0, 0)),            # bias (resident)
            pl.BlockSpec((tb, IN_FEATURES), lambda i: (i, 0)),            # x1 tile
            pl.BlockSpec((tb, OUT_FEATURES), lambda i: (i, 0)),           # x2 tile
            pl.BlockSpec((tb, OUT_FEATURES), lambda i: (i, 0)),           # x3 tile
        ],
        out_specs=pl.BlockSpec((tb, OUT_FEATURES), lambda i: (i, 0)),
        compiler_params=pltpu.CompilerParams(
            dimension_semantics=("parallel",),   # megacore / 2-TC sharding
        ),
    )(wt, b2d, x1, x2, x3)

    return out


def _reference(x1, weight, bias, x2, x3):
    return jnp.maximum(x1 @ weight.T + bias + x2 + x3, 0.0)


def _check(B, key, weight, bias):
    k1, k2, k3 = jax.random.split(key, 3)
    x1 = jax.random.normal(k1, (B, IN_FEATURES), dtype=jnp.float32)
    x2 = jax.random.normal(k2, (B, OUT_FEATURES), dtype=jnp.float32)
    x3 = jax.random.normal(k3, (B, OUT_FEATURES), dtype=jnp.float32)
    out = jax.block_until_ready(fused_linear_add_relu(x1, weight, bias, x2, x3))
    ref = _reference(x1, weight, bias, x2, x3)
    assert out.shape == (B, OUT_FEATURES)
    assert jnp.allclose(out, ref, atol=1e-5, rtol=1e-5)


if __name__ == "__main__":
    key = jax.random.PRNGKey(0)
    k_w, k_b, k_a, k_c, k_d = jax.random.split(key, 5)

    # Deterministic parameter init (mimics nn.Linear uniform(-1/sqrt(fan_in), ...)).
    bound = 1.0 / (IN_FEATURES ** 0.5)
    weight = jax.random.uniform(
        k_w, (OUT_FEATURES, IN_FEATURES), minval=-bound, maxval=bound, dtype=jnp.float32
    )
    bias = jax.random.uniform(
        k_b, (OUT_FEATURES,), minval=-bound, maxval=bound, dtype=jnp.float32
    )

    # 1) Harness-sized check (B = 2, matches the PyTorch module's inputs).
    _check(2, k_a, weight, bias)

    # 2) Ragged multi-tile check (exercises the partial-last-block path).
    _check(3000, k_c, weight, bias)

    # 3) Large-batch check at the 4096-row tile cap (3 grid steps, ragged tail).
    _check(9000, k_d, weight, bias)

    print("KERNEL_OK")
</pallas_src>

<mosaic_0001>
module attributes {stable_mosaic.version = 11 : i64} {
  func.func @_fused_linear_add_relu_kernel(%arg0: i32, %arg1: memref<10x20xf32, #tpu.memory_space<vmem>>, %arg2: memref<1x20xf32, #tpu.memory_space<vmem>>, %arg3: memref<2x10xf32, #tpu.memory_space<vmem>>, %arg4: memref<2x20xf32, #tpu.memory_space<vmem>>, %arg5: memref<2x20xf32, #tpu.memory_space<vmem>>, %arg6: memref<2x20xf32, #tpu.memory_space<vmem>>) attributes {dimension_semantics = [#tpu.dimension_semantics<parallel>], iteration_bounds = array<i64: 1>, scalar_prefetch = 0 : i64, scratch_operands = 0 : i64, tpu.core_type = #tpu.core_type<tc>, window_params = [{pipeline_mode = #tpu.pipeline_mode<synchronous>, transform_indices = @transform_0, window_bounds = array<i64: 10, 20>}, {pipeline_mode = #tpu.pipeline_mode<synchronous>, transform_indices = @transform_1, window_bounds = array<i64: 1, 20>}, {transform_indices = @transform_2, window_bounds = array<i64: 2, 10>}, {transform_indices = @transform_3, window_bounds = array<i64: 2, 20>}, {transform_indices = @transform_4, window_bounds = array<i64: 2, 20>}, {transform_indices = @transform_5, window_bounds = array<i64: 2, 20>}]} {
    %c0 = arith.constant 0 : index
    %c0_0 = arith.constant 0 : index
    %0 = vector.load %arg3[%c0, %c0_0] : memref<2x10xf32, #tpu.memory_space<vmem>>, vector<2x10xf32>
    %c0_1 = arith.constant 0 : index
    %c0_2 = arith.constant 0 : index
    %1 = vector.load %arg1[%c0_1, %c0_2] : memref<10x20xf32, #tpu.memory_space<vmem>>, vector<10x20xf32>
    %cst = arith.constant dense<0.000000e+00> : vector<2x20xf32>
    %2 = tpu.matmul %0, %1, %cst {dimension_numbers = #tpu.dot_dimension_numbers<[1], [0], [0], [1], [0, 0, 1, 1], [], []>} : vector<2x10xf32>, vector<10x20xf32>, vector<2x20xf32> -> vector<2x20xf32>
    %c0_3 = arith.constant 0 : index
    %c0_4 = arith.constant 0 : index
    %3 = vector.load %arg2[%c0_3, %c0_4] : memref<1x20xf32, #tpu.memory_space<vmem>>, vector<1x20xf32>
    %4 = vector.broadcast %3 : vector<1x20xf32> to vector<2x20xf32>
    %5 = arith.addf %2, %4 : vector<2x20xf32>
    %c0_5 = arith.constant 0 : index
    %c0_6 = arith.constant 0 : index
    %6 = vector.load %arg4[%c0_5, %c0_6] : memref<2x20xf32, #tpu.memory_space<vmem>>, vector<2x20xf32>
    %7 = arith.addf %5, %6 : vector<2x20xf32>
    %c0_7 = arith.constant 0 : index
    %c0_8 = arith.constant 0 : index
    %8 = vector.load %arg5[%c0_7, %c0_8] : memref<2x20xf32, #tpu.memory_space<vmem>>, vector<2x20xf32>
    %9 = arith.addf %7, %8 : vector<2x20xf32>
    %cst_9 = arith.constant 0.000000e+00 : f32
    %10 = vector.broadcast %cst_9 : f32 to vector<2x20xf32>
    %11 = arith.maximumf %9, %10 : vector<2x20xf32>
    %c0_10 = arith.constant 0 : index
    %c0_11 = arith.constant 0 : index
    %12 = vector.load %arg6[%c0_10, %c0_11] : memref<2x20xf32, #tpu.memory_space<vmem>>, vector<2x20xf32>
    tpu.vector_store %arg6[%c0_10, %c0_11], %11 {strides = array<i32>} : memref<2x20xf32, #tpu.memory_space<vmem>>, vector<2x20xf32>,
    return
  }
  func.func @transform_0(%arg0: i32) -> (i32, i32) {
    %c0_i32 = arith.constant 0 : i32
    %c0_i32_0 = arith.constant 0 : i32
    %c0_i32_1 = arith.constant 0 : i32
    return %c0_i32, %c0_i32_0 : i32, i32
  }
  func.func @transform_1(%arg0: i32) -> (i32, i32) {
    %c0_i32 = arith.constant 0 : i32
    %c0_i32_0 = arith.constant 0 : i32
    %c0_i32_1 = arith.constant 0 : i32
    return %c0_i32, %c0_i32_0 : i32, i32
  }
  func.func @transform_2(%arg0: i32) -> (i32, i32) {
    %c0_i32 = arith.constant 0 : i32
    %c0_i32_0 = arith.constant 0 : i32
    return %arg0, %c0_i32 : i32, i32
  }
  func.func @transform_3(%arg0: i32) -> (i32, i32) {
    %c0_i32 = arith.constant 0 : i32
    %c0_i32_0 = arith.constant 0 : i32
    return %arg0, %c0_i32 : i32, i32
  }
  func.func @transform_4(%arg0: i32) -> (i32, i32) {
    %c0_i32 = arith.constant 0 : i32
    %c0_i32_0 = arith.constant 0 : i32
    return %arg0, %c0_i32 : i32, i32
  }
  func.func @transform_5(%arg0: i32) -> (i32, i32) {
    %c0_i32 = arith.constant 0 : i32
    %c0_i32_0 = arith.constant 0 : i32
    return %arg0, %c0_i32 : i32, i32
  }
}

</mosaic_0001>

<bundles_post_ra>
// kernel: tpu_custom_call.1
= control target key start
LH: loop header
LB: loop body
LE: loop exit
PB: predicated region body
PF: predicated region fallthrough
CT: control target
= control target key end

     0   :  { %10 = vsyncpa [#allocation3], 0  ;;  %s332_s0 = inlined_call_operand.hbm [shape: f32[10,20], index: 0, kind: input, shape index: {}]   ;;  %s333_s1 = inlined_call_operand.hbm [shape: f32[1,20], index: 1, kind: input, shape index: {}]   ;;  %s334_s2 = inlined_call_operand.hbm [shape: f32[2,10], index: 2, kind: input, shape index: {}]   ;;  %s335_s3 = inlined_call_operand.vmem [shape: f32[2,20], index: 3, kind: input, shape index: {}]   ;;  %s336_s4 = inlined_call_operand.hbm [shape: f32[2,20], index: 4, kind: input, shape index: {}]   ;;  %s337_s5 = inlined_call_operand.hbm [shape: f32[2,20], index: 5, kind: output, shape index: {}]  }
   0x1   :  { %11 = vsyncpa [#allocation6], 0 }
   0x2   :  { %12 = vsyncpa [#allocation9], 0  ;;  %s32_s20 = sshll.u32 %s333_s1, 4  ;;  %s33_s20 = int_to_ptr.hbm [resolvable:$true] %s32_s20 }
   0x3   :  { %13 = vsyncpa [#allocation4], 0  ;;  %s277_s21 = smov [#allocation5]   ;;  %s18_s25 = sshll.u32 %s332_s0, 4  ;;  %s19_s25 = int_to_ptr.hbm [resolvable:$true] %s18_s25 }
   0x4   :  { %s34_s22 = sshll.u32 %s277_s21, 4  ;;  %s278_s26 = smov [#allocation2]   ;;  %s35_s22 = int_to_ptr.vmem [resolvable:$true] %s34_s22 }
   0x5   :  { %37 = dma.hbm_to_vmem [thread:$0]  %s33_s20, 16, %s35_s22, [#allocation6]  }
   0x6   :  { %s20_s27 = sshll.u32 %s278_s26, 4  ;;  %s279_s28 = smov 128   ;;  %s21_s27 = int_to_ptr.vmem [resolvable:$true] %s20_s27 }
   0x7   :  { %s280_s29 = smov 8   ;;  %s43_s1 = sshll.u32 %s334_s2, 4  ;;  %s44_s1 = int_to_ptr.hbm [resolvable:$true] %s43_s1 }
   0x8   :  { %26 = dma.hbm_to_vmem [thread:$0]  %s19_s25, 256, %s21_s27, [#allocation3], %s279_s28, %s279_s28, %s280_s29  }
   0x9   :  { %s281_s7 = smov [#allocation7]   ;;  %s56_s0 = sshll.u32 %s336_s4, 4  ;;  %s57_s0 = int_to_ptr.hbm [resolvable:$true] %s56_s0 }
   0xa   :  { %s45_s8 = sshll.u32 %s281_s7, 4  ;;  %s282_s11 = smov [#allocation8]   ;;  %s46_s8 = int_to_ptr.vmem [resolvable:$true] %s45_s8 }
   0xb   :  { %48 = dma.hbm_to_vmem [thread:$0]  %s44_s1, 32, %s46_s8, [#allocation6]  }
   0xc   :  { %s58_s12 = sshll.u32 %s282_s11, 4  ;;  %s59_s12 = int_to_ptr.vmem [resolvable:$true] %s58_s12 }
   0xd   :  { %61 = dma.hbm_to_vmem [thread:$0]  %s57_s0, 32, %s59_s12, [#allocation9]  }
   0xe   :  { %269 = dma.done.wait [#allocation3], 256  }
   0xf   :  { %270 = vsyncadd [#allocation3], 4294967040 }
  0x10   :  { %271 = dma.done.wait [#allocation6], 48  }
  0x11   :  { %272 = vsyncadd [#allocation6], 4294967248 }
  0x12   :  { %273 = dma.done.wait [#allocation9], 32  }
  0x13   :  { %274 = vsyncadd [#allocation9], 4294967264  ;;  %vm89_vm0 = vcmask 1041408   ;;  %v80_v0 = vld [vmem:[#allocation2 + $0x8] sm:$0x3]  ;;  %v79_v1 = vld [vmem:[#allocation2] sm:$0xff] }
  0x14   :  { %139 = vmatpush.msk.msra.mxu0 %vm89_vm0, %v80_v0  ;;  %v78_v2 = vld [vmem:[#allocation7] sm:$0x3]  ;;  %vm85_vm1 = vcmask 80896   ;;  %v148_v3 = vld [vmem:[#allocation5] ss:$0 sm:$0xff]  ;;  %s283_s13 = smov [#allocation10]  }
  0x15   :  { %v113_v5 = vld [vmem:[%s335_s3] sm:$0x3]  ;;  %v115_v7 = vld [vmem:[#allocation8] sm:$0x3]  ;;  %s125_s14 = sshll.u32 %s283_s13, 4  ;;  %s127_s17 = sshll.u32 %s337_s5, 4  ;;  %s126_s14 = int_to_ptr.vmem [resolvable:$true] %s125_s14  ;;  %s128_s17 = int_to_ptr.hbm [resolvable:$true] %s127_s17 }
  0x16   :  { %108 = vmatpush.msra.mxu0 %v79_v1  ;;  %vm118_vm2 = vcmask 156672  }
  0x17   :  { %140 = vmatmul.msk.f32.vlgmr.msra.gmra.mxu0 %vm85_vm1, %v78_v2 }
  0x94   :  { %v110_v4 = vpop.f32.mrf.mxu0 }
  0x95   :  { %v111_v6 = vadd.f32 %v148_v3, %v110_v4 }
  0x97   :  { %v114_v8 = vadd.f32 %v113_v5, %v111_v6 }
  0x99   :  { %v116_v9 = vadd.f32 %v115_v7, %v114_v8 }
  0x9b   :  { %v117_v10 = vmax.f32 %v116_v9, 0.0 }
  0x9d   :  { %119 = vst.msk [vmem:[#allocation10] sm:$0x3] %vm118_vm2, %v117_v10 }
  0x9e   :  { %130 = dma.vmem_to_hbm [thread:$0]  %s126_s14, 32, %s128_s17, [#allocation4]  }
  0x9f   :  { %275 = dma.done.wait [#allocation4], 32  }
  0xa0   :  { %276 = vsyncadd [#allocation4], 4294967264 }
  0xa1   :  { %135 = vsyncpa [#allocation3], 1 }
  0xa2   :  { %136 = vsyncpa [#allocation6], 1 }
  0xa3   :  { %137 = vsyncpa [#allocation9], 1 }
  0xa4   :  { %138 = vsyncpa [#allocation4], 1 }

</bundles_post_ra>
